<compile_context>
chip_gen: v5e
topology: v5e:2x2
jax: 0.10.0
libtpu: 0.0.40
codegen_flags: <defaults>
</compile_context>

<pallas_src>
import functools

import jax
import jax.numpy as jnp
from jax.experimental import pallas as pl
from jax.experimental.pallas import tpu as pltpu


def _sage_fused_kernel(a0_ref, a1_ref, a2_ref, x_ref, wn_ref, ws_ref, b_ref, o_ref,
                       *, dims):
    """Three SAGEConv('mean') layers for one mini-batch, fully VMEM-resident."""
    h = x_ref[...]                                     # [n_src0, in_size]
    a_refs = (a0_ref, a1_ref, a2_ref)
    n_layers = len(dims)
    for l, (a_ref, (f_in, f_out)) in enumerate(zip(a_refs, dims)):   # unrolled at trace
        a = a_ref[...]                                 # [n_dst, n_src]
        n_dst = a.shape[0]
        # static slices of the packed [3, Kmax, Nmax] parameter stacks
        w_n = wn_ref[l][:f_in, :f_out]
        w_s = ws_ref[l][:f_in, :f_out]
        b = b_ref[l][:, :f_out]                        # [1, f_out]
        # mean aggregation over neighbors, then neighbor + self transforms (two MXU dots
        # sharing one f32 accumulator; h_dst is a prefix of h per DGL block convention).
        agg = jnp.dot(a, h, preferred_element_type=jnp.float32)          # [n_dst, f_in]
        out = (jnp.dot(agg, w_n, preferred_element_type=jnp.float32)
               + jnp.dot(h[:n_dst, :], w_s, preferred_element_type=jnp.float32)
               + b)
        if l != n_layers - 1:
            out = jnp.maximum(out, 0.0)   # ReLU; Dropout(0.5) in eval mode == identity
        h = out
    o_ref[...] = h.astype(o_ref.dtype)


def prepare_sage_params(params):
    """One-time packing of per-layer (W_neigh, W_self, bias) into stacked arrays.

    Hoisted out of the per-call path so the pallas_call receives pre-built arrays.
    """
    dims = tuple((int(w_n.shape[0]), int(w_n.shape[1])) for (w_n, _, _) in params)
    k_max = max(d[0] for d in dims)
    n_max = max(d[1] for d in dims)
    for f_in, _ in dims:
        assert f_in % 8 == 0, "f_in must be a multiple of 8 (sublane alignment)"
    wn = jnp.stack([jnp.pad(w_n, ((0, k_max - w_n.shape[0]), (0, n_max - w_n.shape[1])))
                    for (w_n, _, _) in params])                    # [3, Kmax, Nmax]
    ws = jnp.stack([jnp.pad(w_s, ((0, k_max - w_s.shape[0]), (0, n_max - w_s.shape[1])))
                    for (_, w_s, _) in params])                    # [3, Kmax, Nmax]
    bias = jnp.stack([jnp.pad(b, (0, n_max - b.shape[0])).reshape(1, n_max)
                      for (_, _, b) in params])                    # [3, 1, Nmax]
    return {"wn": wn, "ws": ws, "b": bias, "dims": dims}


def sage_forward(adjs, x, prepped):
    """Batched SAGE forward.

    adjs[l]: [B, n_dst_l, n_src_l] row-normalized block adjacencies, x: [B, n_src0, in].
    prepped: output of prepare_sage_params (built once at init).
    """
    wn, ws, bias, dims = prepped["wn"], prepped["ws"], prepped["b"], prepped["dims"]
    assert len(adjs) == len(dims) == 3
    batch, n_src, f = x.shape
    for l, a in enumerate(adjs):
        assert a.shape[0] == batch and a.shape[2] == n_src, \
            "dst nodes must be a prefix of src nodes (DGL block convention)"
        assert a.shape[1] % 8 == 0 and a.shape[2] % 8 == 0
        expected_in = f if l == 0 else dims[l - 1][1]
        assert dims[l][0] == expected_in, "feature-size mismatch between layers"
        n_src = a.shape[1]
    n_out = adjs[-1].shape[1]
    out_size = dims[-1][1]

    kernel = functools.partial(_sage_fused_kernel, dims=dims)

    def batched_spec(shape):
        nd = len(shape)
        return pl.BlockSpec((None,) + tuple(shape[1:]),
                            lambda bi: (bi,) + (0,) * (nd - 1))

    def shared_spec(shape):
        nd = len(shape)
        return pl.BlockSpec(tuple(shape), lambda bi: (0,) * nd)

    return pl.pallas_call(
        kernel,
        out_shape=jax.ShapeDtypeStruct((batch, n_out, out_size), jnp.float32),
        grid=(batch,),
        in_specs=[batched_spec(adjs[0].shape), batched_spec(adjs[1].shape),
                  batched_spec(adjs[2].shape), batched_spec(x.shape),
                  shared_spec(wn.shape), shared_spec(ws.shape), shared_spec(bias.shape)],
        out_specs=batched_spec((batch, n_out, out_size)),
        compiler_params=pltpu.CompilerParams(dimension_semantics=("parallel",)),
    )(adjs[0], adjs[1], adjs[2], x, wn, ws, bias)


def _sage_reference(adjs_b, x_b, params):
    """Pure-JAX reference (per batch element)."""
    outs = []
    for i in range(x_b.shape[0]):
        h = x_b[i]
        for l, (a_full, (w_n, w_s, b)) in enumerate(zip(adjs_b, params)):
            a = a_full[i]
            n_dst = a.shape[0]
            out = (a @ h) @ w_n + h[:n_dst] @ w_s + b[None, :]
            h = jnp.maximum(out, 0.0) if l != len(params) - 1 else out
        outs.append(h)
    return jnp.stack(outs)


def _make_block_adj(key, n_dst, n_src):
    """Random bipartite block; row-normalized for 'mean' aggregation."""
    mask = (jax.random.uniform(key, (n_dst, n_src)) < 0.3).astype(jnp.float32)
    mask = mask.at[jnp.arange(n_dst), jnp.arange(n_dst)].set(1.0)   # >=1 neighbor per dst
    deg = jnp.maximum(mask.sum(axis=1, keepdims=True), 1.0)
    return mask / deg


if __name__ == "__main__":
    key = jax.random.PRNGKey(0)

    in_size, hid_size, out_size = 16, 32, 8
    # node counts per hop: src(block0)=64 -> dst0=src1=48 -> dst1=src2=32 -> dst2=16
    n_nodes = [64, 48, 32, 16]
    batch = 4   # independent sampled mini-batches per launch (parallel grid axis)

    k_params, k_data = jax.random.split(key)

    # layer params: (W_neigh [f_in, f_out], W_self [f_in, f_out], bias [f_out])
    dims = [(in_size, hid_size), (hid_size, hid_size), (hid_size, out_size)]
    pkeys = jax.random.split(k_params, 9)
    params = []
    for l, (f_in, f_out) in enumerate(dims):
        w_n = jax.random.normal(pkeys[3 * l + 0], (f_in, f_out), jnp.float32) * 0.1
        w_s = jax.random.normal(pkeys[3 * l + 1], (f_in, f_out), jnp.float32) * 0.1
        b = jax.random.normal(pkeys[3 * l + 2], (f_out,), jnp.float32) * 0.01
        params.append((w_n, w_s, b))

    prepped = prepare_sage_params(params)   # one-time init, NOT in the per-call path

    dkeys = jax.random.split(k_data, batch * 4)
    adjs_per_sample, x_per_sample = [], []
    for i in range(batch):
        adjs_per_sample.append(
            [_make_block_adj(dkeys[i * 4 + l], n_nodes[l + 1], n_nodes[l])
             for l in range(3)])
        x_per_sample.append(
            jax.random.normal(dkeys[i * 4 + 3], (n_nodes[0], in_size), jnp.float32))
    adjs_b = [jnp.stack([adjs_per_sample[i][l] for i in range(batch)]) for l in range(3)]
    x_b = jnp.stack(x_per_sample)

    out = sage_forward(adjs_b, x_b, prepped)
    out = jax.block_until_ready(out)

    ref = _sage_reference(adjs_b, x_b, params)
    assert out.shape == (batch, n_nodes[-1], out_size), out.shape
    assert jnp.allclose(out, ref, atol=1e-5, rtol=1e-5), "mismatch vs reference"

    print("KERNEL_OK")
</pallas_src>

<mosaic_0001>
module attributes {stable_mosaic.version = 11 : i64} {
  func.func @_sage_fused_kernel(%arg0: i32, %arg1: memref<1x48x64xf32, #tpu.memory_space<vmem>>, %arg2: memref<1x32x48xf32, #tpu.memory_space<vmem>>, %arg3: memref<1x16x32xf32, #tpu.memory_space<vmem>>, %arg4: memref<1x64x16xf32, #tpu.memory_space<vmem>>, %arg5: memref<3x32x32xf32, #tpu.memory_space<vmem>>, %arg6: memref<3x32x32xf32, #tpu.memory_space<vmem>>, %arg7: memref<3x1x32xf32, #tpu.memory_space<vmem>>, %arg8: memref<1x16x8xf32, #tpu.memory_space<vmem>>) attributes {dimension_semantics = [#tpu.dimension_semantics<parallel>], iteration_bounds = array<i64: 4>, scalar_prefetch = 0 : i64, scratch_operands = 0 : i64, tpu.core_type = #tpu.core_type<tc>, window_params = [{transform_indices = @transform_0, window_bounds = array<i64: 1, 48, 64>}, {transform_indices = @transform_1, window_bounds = array<i64: 1, 32, 48>}, {transform_indices = @transform_2, window_bounds = array<i64: 1, 16, 32>}, {transform_indices = @transform_3, window_bounds = array<i64: 1, 64, 16>}, {pipeline_mode = #tpu.pipeline_mode<synchronous>, transform_indices = @transform_4, window_bounds = array<i64: 3, 32, 32>}, {pipeline_mode = #tpu.pipeline_mode<synchronous>, transform_indices = @transform_5, window_bounds = array<i64: 3, 32, 32>}, {pipeline_mode = #tpu.pipeline_mode<synchronous>, transform_indices = @transform_6, window_bounds = array<i64: 3, 1, 32>}, {transform_indices = @transform_7, window_bounds = array<i64: 1, 16, 8>}]} {
    %c0 = arith.constant 0 : index
    %c0_0 = arith.constant 0 : index
    %c0_1 = arith.constant 0 : index
    %0 = vector.load %arg4[%c0, %c0_0, %c0_1] : memref<1x64x16xf32, #tpu.memory_space<vmem>>, vector<1x64x16xf32>
    %1 = vector.shape_cast %0 : vector<1x64x16xf32> to vector<64x16xf32>
    %c0_2 = arith.constant 0 : index
    %c0_3 = arith.constant 0 : index
    %c0_4 = arith.constant 0 : index
    %2 = vector.load %arg1[%c0_2, %c0_3, %c0_4] : memref<1x48x64xf32, #tpu.memory_space<vmem>>, vector<1x48x64xf32>
    %3 = vector.shape_cast %2 : vector<1x48x64xf32> to vector<48x64xf32>
    %c0_5 = arith.constant 0 : index
    %c0_6 = arith.constant 0 : index
    %c0_7 = arith.constant 0 : index
    %4 = vector.load %arg5[%c0_5, %c0_6, %c0_7] : memref<3x32x32xf32, #tpu.memory_space<vmem>>, vector<1x32x32xf32>
    %5 = vector.shape_cast %4 : vector<1x32x32xf32> to vector<32x32xf32>
    %6 = vector.extract_strided_slice %5 {offsets = [0, 0], sizes = [16, 32], strides = [1, 1]} : vector<32x32xf32> to vector<16x32xf32>
    %c0_8 = arith.constant 0 : index
    %c0_9 = arith.constant 0 : index
    %c0_10 = arith.constant 0 : index
    %7 = vector.load %arg6[%c0_8, %c0_9, %c0_10] : memref<3x32x32xf32, #tpu.memory_space<vmem>>, vector<1x32x32xf32>
    %8 = vector.shape_cast %7 : vector<1x32x32xf32> to vector<32x32xf32>
    %9 = vector.extract_strided_slice %8 {offsets = [0, 0], sizes = [16, 32], strides = [1, 1]} : vector<32x32xf32> to vector<16x32xf32>
    %c0_11 = arith.constant 0 : index
    %c0_12 = arith.constant 0 : index
    %c0_13 = arith.constant 0 : index
    %10 = vector.load %arg7[%c0_11, %c0_12, %c0_13] : memref<3x1x32xf32, #tpu.memory_space<vmem>>, vector<1x1x32xf32>
    %11 = vector.shape_cast %10 : vector<1x1x32xf32> to vector<1x32xf32>
    %cst = arith.constant dense<0.000000e+00> : vector<48x16xf32>
    %12 = tpu.matmul %3, %1, %cst {dimension_numbers = #tpu.dot_dimension_numbers<[1], [0], [0], [1], [0, 0, 1, 1], [], []>} : vector<48x64xf32>, vector<64x16xf32>, vector<48x16xf32> -> vector<48x16xf32>
    %cst_14 = arith.constant dense<0.000000e+00> : vector<48x32xf32>
    %13 = tpu.matmul %12, %6, %cst_14 {dimension_numbers = #tpu.dot_dimension_numbers<[1], [0], [0], [1], [0, 0, 1, 1], [], []>} : vector<48x16xf32>, vector<16x32xf32>, vector<48x32xf32> -> vector<48x32xf32>
    %14 = vector.extract_strided_slice %1 {offsets = [0, 0], sizes = [48, 16], strides = [1, 1]} : vector<64x16xf32> to vector<48x16xf32>
    %cst_15 = arith.constant dense<0.000000e+00> : vector<48x32xf32>
    %15 = tpu.matmul %14, %9, %cst_15 {dimension_numbers = #tpu.dot_dimension_numbers<[1], [0], [0], [1], [0, 0, 1, 1], [], []>} : vector<48x16xf32>, vector<16x32xf32>, vector<48x32xf32> -> vector<48x32xf32>
    %16 = arith.addf %13, %15 : vector<48x32xf32>
    %17 = vector.broadcast %11 : vector<1x32xf32> to vector<48x32xf32>
    %18 = arith.addf %16, %17 : vector<48x32xf32>
    %cst_16 = arith.constant 0.000000e+00 : f32
    %19 = vector.broadcast %cst_16 : f32 to vector<48x32xf32>
    %20 = arith.maximumf %18, %19 : vector<48x32xf32>
    %c0_17 = arith.constant 0 : index
    %c0_18 = arith.constant 0 : index
    %c0_19 = arith.constant 0 : index
    %21 = vector.load %arg2[%c0_17, %c0_18, %c0_19] : memref<1x32x48xf32, #tpu.memory_space<vmem>>, vector<1x32x48xf32>
    %22 = vector.shape_cast %21 : vector<1x32x48xf32> to vector<32x48xf32>
    %c1 = arith.constant 1 : index
    %c0_20 = arith.constant 0 : index
    %c0_21 = arith.constant 0 : index
    %23 = vector.load %arg5[%c1, %c0_20, %c0_21] : memref<3x32x32xf32, #tpu.memory_space<vmem>>, vector<1x32x32xf32>
    %24 = vector.shape_cast %23 : vector<1x32x32xf32> to vector<32x32xf32>
    %c1_22 = arith.constant 1 : index
    %c0_23 = arith.constant 0 : index
    %c0_24 = arith.constant 0 : index
    %25 = vector.load %arg6[%c1_22, %c0_23, %c0_24] : memref<3x32x32xf32, #tpu.memory_space<vmem>>, vector<1x32x32xf32>
    %26 = vector.shape_cast %25 : vector<1x32x32xf32> to vector<32x32xf32>
    %c1_25 = arith.constant 1 : index
    %c0_26 = arith.constant 0 : index
    %c0_27 = arith.constant 0 : index
    %27 = vector.load %arg7[%c1_25, %c0_26, %c0_27] : memref<3x1x32xf32, #tpu.memory_space<vmem>>, vector<1x1x32xf32>
    %28 = vector.shape_cast %27 : vector<1x1x32xf32> to vector<1x32xf32>
    %cst_28 = arith.constant dense<0.000000e+00> : vector<32x32xf32>
    %29 = tpu.matmul %22, %20, %cst_28 {dimension_numbers = #tpu.dot_dimension_numbers<[1], [0], [0], [1], [0, 0, 1, 1], [], []>} : vector<32x48xf32>, vector<48x32xf32>, vector<32x32xf32> -> vector<32x32xf32>
    %cst_29 = arith.constant dense<0.000000e+00> : vector<32x32xf32>
    %30 = tpu.matmul %29, %24, %cst_29 {dimension_numbers = #tpu.dot_dimension_numbers<[1], [0], [0], [1], [0, 0, 1, 1], [], []>} : vector<32x32xf32>, vector<32x32xf32>, vector<32x32xf32> -> vector<32x32xf32>
    %31 = vector.extract_strided_slice %20 {offsets = [0, 0], sizes = [32, 32], strides = [1, 1]} : vector<48x32xf32> to vector<32x32xf32>
    %cst_30 = arith.constant dense<0.000000e+00> : vector<32x32xf32>
    %32 = tpu.matmul %31, %26, %cst_30 {dimension_numbers = #tpu.dot_dimension_numbers<[1], [0], [0], [1], [0, 0, 1, 1], [], []>} : vector<32x32xf32>, vector<32x32xf32>, vector<32x32xf32> -> vector<32x32xf32>
    %33 = arith.addf %30, %32 : vector<32x32xf32>
    %34 = vector.broadcast %28 : vector<1x32xf32> to vector<32x32xf32>
    %35 = arith.addf %33, %34 : vector<32x32xf32>
    %cst_31 = arith.constant 0.000000e+00 : f32
    %36 = vector.broadcast %cst_31 : f32 to vector<32x32xf32>
    %37 = arith.maximumf %35, %36 : vector<32x32xf32>
    %c0_32 = arith.constant 0 : index
    %c0_33 = arith.constant 0 : index
    %c0_34 = arith.constant 0 : index
    %38 = vector.load %arg3[%c0_32, %c0_33, %c0_34] : memref<1x16x32xf32, #tpu.memory_space<vmem>>, vector<1x16x32xf32>
    %39 = vector.shape_cast %38 : vector<1x16x32xf32> to vector<16x32xf32>
    %c2 = arith.constant 2 : index
    %c0_35 = arith.constant 0 : index
    %c0_36 = arith.constant 0 : index
    %40 = vector.load %arg5[%c2, %c0_35, %c0_36] : memref<3x32x32xf32, #tpu.memory_space<vmem>>, vector<1x32x32xf32>
    %41 = vector.shape_cast %40 : vector<1x32x32xf32> to vector<32x32xf32>
    %42 = vector.extract_strided_slice %41 {offsets = [0, 0], sizes = [32, 8], strides = [1, 1]} : vector<32x32xf32> to vector<32x8xf32>
    %c2_37 = arith.constant 2 : index
    %c0_38 = arith.constant 0 : index
    %c0_39 = arith.constant 0 : index
    %43 = vector.load %arg6[%c2_37, %c0_38, %c0_39] : memref<3x32x32xf32, #tpu.memory_space<vmem>>, vector<1x32x32xf32>
    %44 = vector.shape_cast %43 : vector<1x32x32xf32> to vector<32x32xf32>
    %45 = vector.extract_strided_slice %44 {offsets = [0, 0], sizes = [32, 8], strides = [1, 1]} : vector<32x32xf32> to vector<32x8xf32>
    %c2_40 = arith.constant 2 : index
    %c0_41 = arith.constant 0 : index
    %c0_42 = arith.constant 0 : index
    %46 = vector.load %arg7[%c2_40, %c0_41, %c0_42] : memref<3x1x32xf32, #tpu.memory_space<vmem>>, vector<1x1x32xf32>
    %47 = vector.shape_cast %46 : vector<1x1x32xf32> to vector<1x32xf32>
    %48 = vector.extract_strided_slice %47 {offsets = [0, 0], sizes = [1, 8], strides = [1, 1]} : vector<1x32xf32> to vector<1x8xf32>
    %cst_43 = arith.constant dense<0.000000e+00> : vector<16x32xf32>
    %49 = tpu.matmul %39, %37, %cst_43 {dimension_numbers = #tpu.dot_dimension_numbers<[1], [0], [0], [1], [0, 0, 1, 1], [], []>} : vector<16x32xf32>, vector<32x32xf32>, vector<16x32xf32> -> vector<16x32xf32>
    %cst_44 = arith.constant dense<0.000000e+00> : vector<16x8xf32>
    %50 = tpu.matmul %49, %42, %cst_44 {dimension_numbers = #tpu.dot_dimension_numbers<[1], [0], [0], [1], [0, 0, 1, 1], [], []>} : vector<16x32xf32>, vector<32x8xf32>, vector<16x8xf32> -> vector<16x8xf32>
    %51 = vector.extract_strided_slice %37 {offsets = [0, 0], sizes = [16, 32], strides = [1, 1]} : vector<32x32xf32> to vector<16x32xf32>
    %cst_45 = arith.constant dense<0.000000e+00> : vector<16x8xf32>
    %52 = tpu.matmul %51, %45, %cst_45 {dimension_numbers = #tpu.dot_dimension_numbers<[1], [0], [0], [1], [0, 0, 1, 1], [], []>} : vector<16x32xf32>, vector<32x8xf32>, vector<16x8xf32> -> vector<16x8xf32>
    %53 = arith.addf %50, %52 : vector<16x8xf32>
    %54 = vector.broadcast %48 : vector<1x8xf32> to vector<16x8xf32>
    %55 = arith.addf %53, %54 : vector<16x8xf32>
    %c0_46 = arith.constant 0 : index
    %c0_47 = arith.constant 0 : index
    %c0_48 = arith.constant 0 : index
    %56 = vector.load %arg8[%c0_46, %c0_47, %c0_48] : memref<1x16x8xf32, #tpu.memory_space<vmem>>, vector<1x16x8xf32>
    %57 = vector.shape_cast %56 : vector<1x16x8xf32> to vector<16x8xf32>
    %58 = vector.shape_cast %55 : vector<16x8xf32> to vector<1x16x8xf32>
    tpu.vector_store %arg8[%c0_46, %c0_47, %c0_48], %58 {strides = array<i32>} : memref<1x16x8xf32, #tpu.memory_space<vmem>>, vector<1x16x8xf32>,
    return
  }
  func.func @transform_0(%arg0: i32) -> (i32, i32, i32) {
    %c0_i32 = arith.constant 0 : i32
    %c0_i32_0 = arith.constant 0 : i32
    %c0_i32_1 = arith.constant 0 : i32
    return %arg0, %c0_i32, %c0_i32_0 : i32, i32, i32
  }
  func.func @transform_1(%arg0: i32) -> (i32, i32, i32) {
    %c0_i32 = arith.constant 0 : i32
    %c0_i32_0 = arith.constant 0 : i32
    %c0_i32_1 = arith.constant 0 : i32
    return %arg0, %c0_i32, %c0_i32_0 : i32, i32, i32
  }
  func.func @transform_2(%arg0: i32) -> (i32, i32, i32) {
    %c0_i32 = arith.constant 0 : i32
    %c0_i32_0 = arith.constant 0 : i32
    %c0_i32_1 = arith.constant 0 : i32
    return %arg0, %c0_i32, %c0_i32_0 : i32, i32, i32
  }
  func.func @transform_3(%arg0: i32) -> (i32, i32, i32) {
    %c0_i32 = arith.constant 0 : i32
    %c0_i32_0 = arith.constant 0 : i32
    %c0_i32_1 = arith.constant 0 : i32
    return %arg0, %c0_i32, %c0_i32_0 : i32, i32, i32
  }
  func.func @transform_4(%arg0: i32) -> (i32, i32, i32) {
    %c0_i32 = arith.constant 0 : i32
    %c0_i32_0 = arith.constant 0 : i32
    %c0_i32_1 = arith.constant 0 : i32
    %c0_i32_2 = arith.constant 0 : i32
    return %c0_i32, %c0_i32_0, %c0_i32_1 : i32, i32, i32
  }
  func.func @transform_5(%arg0: i32) -> (i32, i32, i32) {
    %c0_i32 = arith.constant 0 : i32
    %c0_i32_0 = arith.constant 0 : i32
    %c0_i32_1 = arith.constant 0 : i32
    %c0_i32_2 = arith.constant 0 : i32
    return %c0_i32, %c0_i32_0, %c0_i32_1 : i32, i32, i32
  }
  func.func @transform_6(%arg0: i32) -> (i32, i32, i32) {
    %c0_i32 = arith.constant 0 : i32
    %c0_i32_0 = arith.constant 0 : i32
    %c0_i32_1 = arith.constant 0 : i32
    %c0_i32_2 = arith.constant 0 : i32
    return %c0_i32, %c0_i32_0, %c0_i32_1 : i32, i32, i32
  }
  func.func @transform_7(%arg0: i32) -> (i32, i32, i32) {
    %c0_i32 = arith.constant 0 : i32
    %c0_i32_0 = arith.constant 0 : i32
    %c0_i32_1 = arith.constant 0 : i32
    return %arg0, %c0_i32, %c0_i32_0 : i32, i32, i32
  }
}

</mosaic_0001>

<bundles_post_ra>
// kernel: tpu_custom_call.1
= control target key start
LH: loop header
LB: loop body
LE: loop exit
PB: predicated region body
PF: predicated region fallthrough
CT: control target
= control target key end

     0   :  { %12 = vsyncpa [#allocation3], 0  ;;  %s1451_s0 = inlined_call_operand.vmem [shape: f32[4,48,64], index: 0, kind: input, shape index: {}]   ;;  %s1452_s1 = inlined_call_operand.vmem [shape: f32[4,32,48], index: 1, kind: input, shape index: {}]   ;;  %s1453_s2 = inlined_call_operand.hbm [shape: f32[4,16,32], index: 2, kind: input, shape index: {}]   ;;  %s1454_s3 = inlined_call_operand.vmem [shape: f32[4,64,16], index: 3, kind: input, shape index: {}]   ;;  %s1455_s4 = inlined_call_operand.hbm [shape: f32[3,32,32], index: 4, kind: input, shape index: {}]   ;;  %s1456_s5 = inlined_call_operand.hbm [shape: f32[3,32,32], index: 5, kind: input, shape index: {}]   ;;  %s1457_s6 = inlined_call_operand.vmem [shape: f32[3,1,32], index: 6, kind: input, shape index: {}]   ;;  %s1458_s7 = inlined_call_operand.vmem [shape: f32[4,16,8], index: 7, kind: output, shape index: {}]  }
   0x1   :  { %14 = vsyncpa [#allocation3 + $0x1], 0 }
   0x2   :  { %15 = vsyncpa [#allocation5], 0  ;;  %s1275_s24 = smov 0   ;;  %s1277_s25 = smov 0  }
   0x3   :  { %s1279_s26 = smov 0   ;;  %s1281_s27 = smov 0  }
   0x4 LB: > { %s1294_s28 = sadd.s32 4294967295, %s1229_s27   ;;  %p93_p0 = scmp.ne.s32.totalorder %s1221_s25, %s1217_s24  ;;  %s1229_s27 = sphi %s1281_s27, %s1466_s27   ;;  %s1225_s26 = sphi %s1279_s26, %s1465_s26   ;;  %s1221_s25 = sphi %s1277_s25, %s1464_s25   ;;  %s1217_s24 = sphi %s1275_s24, %s1463_s24  }
   0x5   : > { %p94_p1 = scmp.eq.s32.totalorder %s1294_s28, 0  ;;  %p973_p2 = scmp.ge.s32.totalorder %s1229_s27, 1 }
   0x6   : > { %p219_p3 = scmp.lt.s32.totalorder %s1229_s27, 5  ;;  %s230_s9 = sshll.u32 %s1455_s4, 4  ;;  %s231_s9 = int_to_ptr.hbm [resolvable:$true] %s230_s9 }
   0x7   : > { %p1302_p4 = por %p94_p1, %p93_p0  ;;  %s1231_s11 = smov [#allocation4]  }
   0x8   : > { %p1309_p5 = pnand %p973_p2, %p219_p3  ;;  %s232_s12 = sshll.u32 %s1231_s11, 4  ;;  %s233_s12 = int_to_ptr.vmem [resolvable:$true] %s232_s12 }
   0x9   : > { %s244_s15 = sshll.u32 %s1456_s5, 4  ;;  %s1232_s16 = smov 128   ;;  %s245_s15 = int_to_ptr.hbm [resolvable:$true] %s244_s15 }
   0xa   : > { %p1046_p6 = pneg %p1309_p5  ;;  %s1233_s17 = smov 8  }
   0xb   : > { %s1234_s18 = smov [#allocation6]   ;;  %s1327_s20 = sadd.s32 1, %s1229_s27  }
   0xc   : > { %p1047_p7 = pnand %p1046_p6, %p94_p1  ;;  %s246_s19 = sshll.u32 %s1234_s18, 4  ;;  %s247_s19 = int_to_ptr.vmem [resolvable:$true] %s246_s19 }
   0xd   : > { %s80_s21 = sadd.s32 1, %s1225_s26  ;;  %s77_s22 = ssub.s32 %s1229_s27, %s1327_s20 }
   0xe   : > { %1049 = dma.hbm_to_vmem [thread:$0]  (!%p1047_p7), %s231_s9, 1536, %s233_s12, [#allocation5], %s1232_s16, %s1232_s16, %s1233_s17  }
   0xf   : > { %1052 = dma.hbm_to_vmem [thread:$0]  (!%p1047_p7), %s245_s15, 1536, %s247_s19, [#allocation5], %s1232_s16, %s1232_s16, %s1233_s17  }
  0x10   : > { %p87_p8 = scmp.ne.s32.totalorder %s1225_s26, %s1221_s25  ;;  %p78_p9 = scmp.eq.s32.totalorder %s77_s22, 0 }
  0x11   : > { %p88_p10 = scmp.eq.s32.totalorder %s1229_s27, 0  ;;  %s279_s23 = sand.u32 1, %s1225_s26  }
  0x12   : > { %s1337_s24 = scalar_select %p78_p9, %s1225_s26, %s80_s21  }
  0x13   : > { %p89_p11 = por %p88_p10, %p87_p8  ;;  %p1059_p12 = scmp.lt.s32.totalorder %s1229_s27, 4 }
  0x14   : > { %s977_s30 = sshll.u32 %s279_s23, 4  ;;  %s1031_s8 = sshll.u32 %s1229_s27, 4 }
  0x15   : > { %s288_s12 = scalar_lea.hbm %s1453_s2, %s1031_s8  ;;  %s283_s14 = scalar_lea.vmem [#allocation2], %s977_s30 }
  0x16   : > { %s289_s13 = sshll.u32 %s288_s12, 4  ;;  %s291_s15 = sshll.u32 %s283_s14, 4  ;;  %s290_s13 = int_to_ptr.hbm [resolvable:$true] %s289_s13  ;;  %s292_s15 = int_to_ptr.vmem [resolvable:$true] %s291_s15 }
  0x17   : > { %p1344_p13 = pnand %p1059_p12, %p89_p11  ;;  %s280_s19 = scalar_lea.sflag [#allocation3], %s279_s23 }
  0x18   : > { %s1161_s21 = sshra.s32 %s290_s13, 4  ;;  %s1168_s30 = scalar_lea.hbm %s1453_s2, 64  ;;  %s1162_s21 = int_to_ptr.hbm [resolvable:$true] %s1161_s21 }
  0x19   : > { %s1163_s22 = scalar_lea.hbm %s1162_s21, 16  ;;  %p1165_p2 = pneg %p1344_p13 }
  0x1a   : > { %p1164_p0 = scmp.ne.s32.totalorder %s1162_s21, %s1163_s22  ;;  %p1169_p7 = scmp.lt.s32.totalorder %s1162_s21, %s1453_s2 }
  0x1b   : > { %p1170_p8 = scmp.lt.s32.totalorder %s1168_s30, %s1163_s22 }
  0x1c   : > { %p1166_p3 = pnand %p1165_p2, %p1164_p0 }
  0x1d   : > { %p1171_p9 = por %p1170_p8, %p1169_p7 }
  0x1e   : > { %p1167_p6 = pneg %p1166_p3 }
  0x20   : > { %p1172_p10 = pnand %p1171_p9, %p1167_p6 }
  0x22   : > { %1175 = shalt.err (!%p1172_p10)
}
  0x23   : > { %1056 = dma.hbm_to_vmem [thread:$0]  (!%p1344_p13), %s290_s13, 256, %s292_s15, %s280_s19, %s1232_s16, %s1232_s16, %s1233_s17  }
  0x24   : > { %311 = sbr.rel (%p1309_p5) target bundleno = 952 (0x3b8), region = 48  ;;  %s313_s23 = sand.u32 (!%p1309_p5), 1, %s1221_s25  }
  0x25   : > { %s1364_s12 = sshll.u32 (!%p1309_p5), %s313_s23, 4  ;;  %s314_s14 = scalar_lea.sflag (!%p1309_p5), [#allocation3], %s313_s23 }
  0x26   : > { %s317_s21 = scalar_lea.vmem (!%p1309_p5), [#allocation2], %s1364_s12 }
  0x29   : > { %1208 = dma.done.wait (%p1302_p4), %s314_s14, 256  }
  0x2a   : > { %1210 = vsyncadd (%p1302_p4), %s314_s14, 4294967040 }
  0x2b   : > { %1212 = dma.done.wait (%p94_p1), [#allocation5], 3072  }
  0x2c   : > { %1214 = vsyncadd (%p94_p1), [#allocation5], 4294964224  ;;  %p374_p5 = scmp.lt.s32.totalorder %s1294_s28, 3  ;;  %vm413_vm0 = vcmask 523264   ;;  %v409_v10 = vld [vmem:[#allocation4 + $0x8] sm:$0xff]  ;;  %v408_v15 = vld [vmem:[#allocation4] sm:$0xff] }
  0x2d   : > { %553 = vmatpush.msra.mxu2 %v409_v10  ;;  %v411_v16 = vld [vmem:[#allocation6 + $0x8] sm:$0xff]  ;;  %v410_v17 = vld [vmem:[#allocation6] sm:$0xff]  ;;  %vm467_vm1 = vcmask 130048   ;;  %vm605_vm2 = vcmask 392192   ;;  %v602_v56 = vld [vmem:[#allocation6 + $0x38] sm:$0xff]  ;;  %vm647_vm3 = vcmask 261120  }
  0x2e   : > { %s1468_s28 = smov (!%p374_p5, %s1294_s28), 3  ;;  %500 = vmatpush.msra.mxu1 %v411_v16  ;;  %v1098_v39 = vld [vmem:[%s1457_s6] ss:$0 sm:$0xff]  ;;  %v601_v57 = vld [vmem:[#allocation6 + $0x30] sm:$0xff]  ;;  %v600_v58 = vld [vmem:[#allocation6 + $0x28] sm:$0xff]  ;;  %vm847_vm4 = vcmask 64512  }
  0x2f   : > { %s1033_s10 = sshll.u32 %s1468_s28, 6  ;;  %s1035_s29 = smul.u32 48, %s1468_s28  ;;  %554 = vmatpush.msra.mxu2 %v408_v15  ;;  %v599_v59 = vld [vmem:[#allocation6 + $0x20] sm:$0xff]  ;;  %v597_v63 = vld [vmem:[#allocation4 + $0x38] sm:$0xff] }
  0x30   : > { %s388_s13 = scalar_lea.vmem %s1454_s3, %s1033_s10  ;;  %501 = vmatpush.msra.mxu1 %v410_v17  ;;  %s1032_s8 = sshll.u32 %s1468_s28, 5  ;;  %v749_v10 = vld [vmem:[#allocation6 + $0x40] sm:$0xff] }
  0x31   : > { %v401_v0 = vld [vmem:[%s388_s13 + $0x38] sm:$0xff]  ;;  %v400_v1 = vld [vmem:[%s388_s13 + $0x30] sm:$0xff]  ;;  %v399_v2 = vld [vmem:[%s388_s13 + $0x28] sm:$0xff]  ;;  %s378_s19 = scalar_lea.vmem %s1451_s0, %s1035_s29  ;;  %s383_s11 = scalar_lea.vmem %s1452_s1, %s1032_s8 }
  0x32   : > { %440 = vmatpush.msra.mxu0 %v401_v0  ;;  %v398_v3 = vld [vmem:[%s388_s13 + $0x20] sm:$0xff]  ;;  %v397_v4 = vld [vmem:[%s388_s13 + $0x18] sm:$0xff]  ;;  %v396_v5 = vld [vmem:[%s388_s13 + $0x10] sm:$0xff]  ;;  %713 = vmatpush.msrb.mxu1 %v597_v63  ;;  %s1034_s12 = sshll.u32 %s1468_s28, 4 }
  0x33   : > { %v395_v6 = vld [vmem:[%s388_s13 + $0x8] sm:$0xff]  ;;  %v394_v7 = vld [vmem:[%s388_s13] sm:$0xff]  ;;  %v404_v11 = vld [vmem:[%s378_s19 + $0x10] sm:$0xff]  ;;  %s393_s13 = scalar_lea.vmem %s1458_s7, %s1034_s12 }
  0x34   : > { %441 = vmatpush.msra.mxu0 %v400_v1  ;;  %v402_v8 = vld [vmem:[%s378_s19] sm:$0xff]  ;;  %v403_v9 = vld [vmem:[%s378_s19 + $0x8] sm:$0xff]  ;;  %v405_v12 = vld [vmem:[%s378_s19 + $0x18] sm:$0xff]  ;;  %997 = vmatmul.msk.f32.vlgmr.msra.gmra.mxu1 %vm467_vm1, %v394_v7 }
  0x35   : > { %v406_v13 = vld [vmem:[%s378_s19 + $0x20] sm:$0xff]  ;;  %v407_v14 = vld [vmem:[%s378_s19 + $0x28] sm:$0xff]  ;;  %v591_v61 = vld [vmem:[%s383_s11 + $0x10] sm:$0xff] }
  0x36   : > { %442 = vmatpush.msra.mxu0 %v399_v2  ;;  %v589_v55 = vld [vmem:[%s383_s11] sm:$0xff]  ;;  %v590_v60 = vld [vmem:[%s383_s11 + $0x8] sm:$0xff]  ;;  %v592_v62 = vld [vmem:[%s383_s11 + $0x18] sm:$0xff] }
  0x37   : > { %v596_v0 = vld [vmem:[#allocation4 + $0x30] sm:$0xff]  ;;  %v595_v1 = vld [vmem:[#allocation4 + $0x28] sm:$0xff] }
  0x38   : > { %443 = vmatpush.msra.mxu0 %v398_v3  ;;  %714 = vmatpush.msrb.mxu1 %v596_v0 }
  0x3a   : > { %444 = vmatpush.msra.mxu0 %v397_v4  ;;  %715 = vmatpush.msrb.mxu1 %v595_v1 }
  0x3c   : > { %445 = vmatpush.msra.mxu0 %v396_v5  ;;  %998 = vmatmul.msk.f32.gmra.mxu1 %vm467_vm1, %v395_v6 }
  0x3e   : > { %446 = vmatpush.msra.mxu0 %v395_v6 }
  0x40   : > { %447 = vmatpush.msra.mxu0 %v394_v7  ;;  %v752_v7 = vld [vmem:[#allocation6 + $0x58] sm:$0xff] }
  0x41   : > { %991 = vmatmul.msk.f32.vlgmr.msra.gmra.mxu0 %vm413_vm0, %v402_v8  ;;  %v751_v8 = vld [vmem:[#allocation6 + $0x50] sm:$0xff] }
  0x42   : > { %802 = vmatpush.msrb.mxu0 %v752_v7 }
  0x44   : > { %999 = vmatmul.msk.f32.gmra.mxu1 %vm467_vm1, %v396_v5  ;;  %803 = vmatpush.msrb.mxu0 %v751_v8 }
  0x49   : > { %992 = vmatmul.msk.f32.gmra.mxu0 %vm413_vm0, %v403_v9  ;;  %v750_v9 = vld [vmem:[#allocation6 + $0x48] sm:$0xff] }
  0x4a   : > { %804 = vmatpush.msrb.mxu0 %v750_v9 }
  0x4c   : > { %1000 = vmatmul.msk.f32.gmra.mxu1 %vm467_vm1, %v397_v4  ;;  %805 = vmatpush.msrb.mxu0 %v749_v10 }
  0x51   : > { %993 = vmatmul.msk.f32.gmra.mxu0 %vm413_vm0, %v404_v11 }
  0x54   : > { %1001 = vmatmul.msk.f32.gmra.mxu1 %vm467_vm1, %v398_v3 }
  0x59   : > { %994 = vmatmul.msk.f32.gmra.mxu0 %vm413_vm0, %v405_v12  ;;  %v1099_v12 = vld [vmem:[%s1457_s6 + $0x1] ss:$0 sm:$0xff] }
  0x5c   : > { %1002 = vmatmul.msk.f32.gmra.mxu1 %vm467_vm1, %v399_v2  ;;  %v594_v2 = vld [vmem:[#allocation4 + $0x20] sm:$0xff] }
  0x5d   : > { %716 = vmatpush.msrb.mxu1 %v594_v2 }
  0x61   : > { %995 = vmatmul.msk.f32.gmra.mxu0 %vm413_vm0, %v406_v13 }
  0x69   : > { %996 = vmatmul.msk.f32.gmra.mxu0 %vm413_vm0, %v407_v14 }
  0xb1   : > { %v503_v24 = vpop.f32.mrf.mxu1 }
  0xb9   : > { %v506_v25 = vpop.f32.mrf.mxu1 }
  0xbe   : > { %v449_v18 = vpop.f32.mrf.mxu0 }
  0xbf   : > { %1003 = vmatmul.msk.f32.vlgmr.msra.gmra.mxu2 %vm467_vm1, %v449_v18 }
  0xc1   : > { %v509_v28 = vpop.f32.mrf.mxu1 }
  0xc6   : > { %v452_v19 = vpop.f32.mrf.mxu0 }
  0xc7   : > { %1004 = vmatmul.msk.f32.gmra.mxu2 %vm467_vm1, %v452_v19 }
  0xc9   : > { %v512_v30 = vpop.f32.mrf.mxu1 }
  0xce   : > { %v455_v20 = vpop.f32.mrf.mxu0 }
  0xcf   : > { %1005 = vmatmul.msk.f32.gmra.mxu2 %vm467_vm1, %v455_v20 }
  0xd1   : > { %v515_v32 = vpop.f32.mrf.mxu1 }
  0xd6   : > { %v458_v21 = vpop.f32.mrf.mxu0 }
  0xd7   : > { %1006 = vmatmul.msk.f32.gmra.mxu2 %vm467_vm1, %v458_v21 }
  0xd9   : > { %v518_v34 = vpop.f32.mrf.mxu1 }
  0xde   : > { %v461_v22 = vpop.f32.mrf.mxu0 }
  0xdf   : > { %1007 = vmatmul.msk.f32.gmra.mxu2 %vm467_vm1, %v461_v22 }
  0xe6   : > { %v464_v23 = vpop.f32.mrf.mxu0 }
  0xe7   : > { %1008 = vmatmul.msk.f32.gmra.mxu2 %vm467_vm1, %v464_v23 }
 0x142   : > { %v556_v26 = vpop.f32.mrf.mxu2 }
 0x143   : > { %v557_v46 = vadd.f32 %v556_v26, %v503_v24 }
 0x145   : > { %v577_v52 = vadd.f32 %v1098_v39, %v557_v46 }
 0x147   : > { %v583_v54 = vmax.f32 %v577_v52, 0.0 }
 0x14a   : > { %v559_v27 = vpop.f32.mrf.mxu2 }
 0x14b   : > { %v560_v43 = vadd.f32 %v559_v27, %v506_v25 }
 0x14d   : > { %v578_v50 = vadd.f32 %v1098_v39, %v560_v43 }
 0x14f   : > { %v584_v53 = vmax.f32 %v578_v50, 0.0 }
 0x152   : > { %v562_v29 = vpop.f32.mrf.mxu2 }
 0x153   : > { %v563_v40 = vadd.f32 %v562_v29, %v509_v28 }
 0x155   : > { %v579_v48 = vadd.f32 %v1098_v39, %v563_v40 }
 0x157   : > { %v585_v51 = vmax.f32 %v579_v48, 0.0 }
 0x15a   : > { %v565_v31 = vpop.f32.mrf.mxu2 }
 0x15b   : > { %v566_v37 = vadd.f32 %v565_v31, %v512_v30 }
 0x15d   : > { %v580_v45 = vadd.f32 %v1098_v39, %v566_v37  ;;  %v744_v37 = vld [vmem:[#allocation4 + $0x40] sm:$0xff] }
 0x15f   : > { %v586_v49 = vmax.f32 %v580_v45, 0.0 }
 0x162   : > { %v568_v33 = vpop.f32.mrf.mxu2 }
 0x163   : > { %v569_v35 = vadd.f32 %v568_v33, %v515_v32  ;;  %v741_v32 = vld [vmem:[%s317_s21] sm:$0xff]  ;;  %v742_v33 = vld [vmem:[%s317_s21 + $0x8] sm:$0xff] }
 0x165   : > { %v581_v42 = vadd.f32 %v1098_v39, %v569_v35  ;;  %v746_v35 = vld [vmem:[#allocation4 + $0x50] sm:$0xff] }
 0x167   : > { %v587_v47 = vmax.f32 %v581_v42, 0.0 }
 0x16a   : > { %v571_v36 = vpop.f32.mrf.mxu2 }
 0x16b   : > { %v572_v38 = vadd.f32 %v571_v36, %v518_v34  ;;  %v747_v34 = vld [vmem:[#allocation4 + $0x58] sm:$0xff]  ;;  %v745_v36 = vld [vmem:[#allocation4 + $0x48] sm:$0xff] }
 0x16d   : > { %v582_v41 = vadd.f32 %v1098_v39, %v572_v38 }
 0x16f   : > { %v588_v44 = vmax.f32 %v582_v41, 0.0  ;;  %v1100_v41 = vld [vmem:[%s1457_s6 + $0x2] ss:$0 sm:$0xff] }
 0x171   : > { %628 = vmatpush.msra.mxu3 %v588_v44 }
 0x173   : > { %629 = vmatpush.msra.mxu3 %v587_v47 }
 0x175   : > { %630 = vmatpush.msra.mxu3 %v586_v49 }
 0x177   : > { %631 = vmatpush.msra.mxu3 %v585_v51 }
 0x179   : > { %632 = vmatpush.msra.mxu3 %v584_v53 }
 0x17b   : > { %633 = vmatpush.msra.mxu3 %v583_v54 }
 0x17c   : > { %1010 = vmatmul.msk.f32.vlgmr.msra.gmra.mxu3 %vm605_vm2, %v589_v55 }
 0x17d   : > { %672 = vmatpush.msrb.mxu3 %v602_v56 }
 0x17f   : > { %673 = vmatpush.msrb.mxu3 %v601_v57 }
 0x181   : > { %674 = vmatpush.msrb.mxu3 %v600_v58 }
 0x183   : > { %675 = vmatpush.msrb.mxu3 %v599_v59 }
 0x184   : > { %1011 = vmatmul.msk.f32.gmra.mxu3 %vm605_vm2, %v590_v60 }
 0x18c   : > { %1012 = vmatmul.msk.f32.gmra.mxu3 %vm605_vm2, %v591_v61 }
 0x194   : > { %1013 = vmatmul.msk.f32.gmra.mxu3 %vm605_vm2, %v592_v62 }
 0x19c   : > { %1014 = vmatmul.msk.f32.vlgmr.msrb.gmra.mxu3 %vm647_vm3, %v583_v54 }
 0x1a4   : > { %1015 = vmatmul.msk.f32.gmra.mxu3 %vm647_vm3, %v584_v53 }
 0x1ac   : > { %1016 = vmatmul.msk.f32.gmra.mxu3 %vm647_vm3, %v585_v51 }
 0x1b4   : > { %1017 = vmatmul.msk.f32.gmra.mxu3 %vm647_vm3, %v586_v49 }
 0x1ff   : > { %v635_v3 = vpop.f32.mrf.mxu3 }
 0x200   : > { %1018 = vmatmul.msk.f32.vlgmr.msrb.gmra.mxu1 %vm647_vm3, %v635_v3 }
 0x207   : > { %v638_v4 = vpop.f32.mrf.mxu3 }
 0x208   : > { %1019 = vmatmul.msk.f32.gmra.mxu1 %vm647_vm3, %v638_v4 }
 0x20f   : > { %v641_v5 = vpop.f32.mrf.mxu3 }
 0x210   : > { %1020 = vmatmul.msk.f32.gmra.mxu1 %vm647_vm3, %v641_v5 }
 0x217   : > { %v644_v6 = vpop.f32.mrf.mxu3 }
 0x218   : > { %1021 = vmatmul.msk.f32.gmra.mxu1 %vm647_vm3, %v644_v6 }
 0x21f   : > { %v677_v11 = vpop.f32.mrf.mxu3 }
 0x227   : > { %v680_v16 = vpop.f32.mrf.mxu3 }
 0x22f   : > { %v683_v22 = vpop.f32.mrf.mxu3 }
 0x237   : > { %v686_v25 = vpop.f32.mrf.mxu3 }
 0x27d   : > { %v718_v13 = vpop.f32.mrf.mxu1 }
 0x27e   : > { %v719_v14 = vadd.f32 %v718_v13, %v677_v11 }
 0x280   : > { %v733_v15 = vadd.f32 %v1099_v12, %v719_v14 }
 0x282   : > { %v737_v17 = vmax.f32 %v733_v15, 0.0 }
 0x284   : > { %1025 = vmatmul.msk.f32.vlgmr.msrb.gmra.mxu0 %vm647_vm3, %v737_v17 }
 0x285   : > { %v721_v18 = vpop.f32.mrf.mxu1 }
 0x286   : > { %v722_v19 = vadd.f32 %v721_v18, %v680_v16 }
 0x288   : > { %v734_v20 = vadd.f32 %v1099_v12, %v722_v19 }
 0x28a   : > { %v738_v21 = vmax.f32 %v734_v20, 0.0 }
 0x28c   : > { %1026 = vmatmul.msk.f32.gmra.mxu0 %vm647_vm3, %v738_v21 }
 0x28d   : > { %v724_v23 = vpop.f32.mrf.mxu1 }
 0x28e   : > { %v725_v24 = vadd.f32 %v724_v23, %v683_v22 }
 0x290   : > { %v735_v29 = vadd.f32 %v1099_v12, %v725_v24 }
 0x292   : > { %v739_v31 = vmax.f32 %v735_v29, 0.0 }
 0x295   : > { %v727_v26 = vpop.f32.mrf.mxu1 }
 0x296   : > { %v728_v27 = vadd.f32 %v727_v26, %v686_v25 }
 0x298   : > { %v736_v28 = vadd.f32 %v1099_v12, %v728_v27 }
 0x29a   : > { %v740_v30 = vmax.f32 %v736_v28, 0.0 }
 0x29c   : > { %773 = vmatpush.msrb.mxu2 %v740_v30 }
 0x29e   : > { %774 = vmatpush.msrb.mxu2 %v739_v31 }
 0x2a0   : > { %775 = vmatpush.msrb.mxu2 %v738_v21 }
 0x2a2   : > { %776 = vmatpush.msrb.mxu2 %v737_v17 }
 0x2a3   : > { %1023 = vmatmul.msk.f32.vlgmr.msrb.gmra.mxu2 %vm647_vm3, %v741_v32 }
 0x2a4   : > { %831 = vmatpush.msra.mxu2 %v747_v34 }
 0x2a6   : > { %832 = vmatpush.msra.mxu2 %v746_v35 }
 0x2a8   : > { %833 = vmatpush.msra.mxu2 %v745_v36 }
 0x2aa   : > { %834 = vmatpush.msra.mxu2 %v744_v37 }
 0x2ab   : > { %1024 = vmatmul.msk.f32.gmra.mxu2 %vm647_vm3, %v742_v33 }
 0x301   : > { %v807_v40 = vpop.f32.mrf.mxu0 }
 0x309   : > { %v810_v45 = vpop.f32.mrf.mxu0 }
 0x326   : > { %v778_v38 = vpop.f32.mrf.mxu2 }
 0x327   : > { %1027 = vmatmul.msk.f32.vlgmr.msra.gmra.mxu2 %vm647_vm3, %v778_v38 }
 0x32e   : > { %v781_v39 = vpop.f32.mrf.mxu2 }
 0x32f   : > { %1028 = vmatmul.msk.f32.gmra.mxu2 %vm647_vm3, %v781_v39 }
 0x3aa   : > { %v836_v42 = vpop.f32.mrf.mxu2 }
 0x3ab   : > { %v837_v43 = vadd.f32 %v836_v42, %v807_v40 }
 0x3ad   : > { %v845_v44 = vadd.f32 %v1100_v41, %v837_v43 }
 0x3af   : > { %848 = vst.msk [vmem:[%s393_s13] sm:$0xff] %vm847_vm4, %v845_v44 }
 0x3b2   : > { %v839_v46 = vpop.f32.mrf.mxu2 }
 0x3b3   : > { %v840_v47 = vadd.f32 %v839_v46, %v810_v45 }
 0x3b5   : > { %v846_v48 = vadd.f32 %v1100_v41, %v840_v47 }
 0x3b7   : > { %849 = vst.msk [vmem:[%s393_s13 + $0x8] sm:$0xff] %vm847_vm4, %v846_v48 }
 0x3b8 PF: > { %s1462_s28 = smov %s1337_s24  ;;  %p18_p1 = scmp.ge.s32.totalorder %s1327_s20, 6  }
 0x3b9   : > { %s1463_s24 = smov %s1221_s25  ;;  %s1464_s25 = smov %s1225_s26 }
 0x3ba   : > { %s1465_s26 = smov %s1462_s28  ;;  %s1466_s27 = smov %s1327_s20 }
 0x3bb   :  { %20 = sbr.rel (!%p18_p1) target bundleno = 4 (0x4), region = 111 }
 0x3c0   :  { %871 = vsyncpa [#allocation3], 1 }
 0x3c1   :  { %873 = vsyncpa [#allocation3 + $0x1], 1 }
 0x3c2   :  { %874 = vsyncpa [#allocation5], 1 }

</bundles_post_ra>
